<compile_context>
chip_gen: v7x
topology: tpu7x:2x2x1
jax: 0.10.0
libtpu: 0.0.40
codegen_flags: <defaults>
</compile_context>

<pallas_src>
import jax
import jax.numpy as jnp
from jax.experimental import pallas as pl
from jax.experimental.pallas import tpu as pltpu


def _round_up(a, b):
    return ((a + b - 1) // b) * b


def _vmem_budget_bytes():
    """~75% of physical per-core VMEM (v5e/v6e: 128 MiB -> 96, v7x: 64 -> 48)."""
    try:
        cap = int(pltpu.get_tpu_info().vmem_capacity_bytes)
    except Exception:
        cap = 64 * 1024 * 1024
    return int(0.75 * cap)


def _pick_tile(dim_pad, requested):
    """Largest 128-multiple divisor of dim_pad that is <= requested."""
    requested = max(128, min(dim_pad, (requested // 128) * 128))
    t = requested
    while t > 128:
        if dim_pad % t == 0:
            return t
        t -= 128
    return 128


def _pick_tm(M, requested, align):
    """Batch tile: minimize row padding; tile is a multiple of `align` sublanes."""
    M_align = _round_up(max(M, 1), align)
    requested = max(align, (requested // align) * align)
    if M_align <= requested:
        return M_align, M_align
    floor = max(align, 64)
    t = requested
    while t >= floor:
        if M_align % t == 0:
            return t, M_align
        t -= align
    # No decent divisor: accept rounding M up to the requested tile.
    return requested, _round_up(M, requested)


# --------------------------- kernels ----------------------------------------


def _fast_kernel(x_ref, w_ref, b_ref, o_ref):
    # Whole weight matrix resident in VMEM; single matmul + epilogue per tile.
    z = jnp.dot(x_ref[...], w_ref[...], preferred_element_type=jnp.float32)
    z = z + b_ref[...].astype(jnp.float32)
    o_ref[...] = jnp.tanh(z).astype(o_ref.dtype)


def _reduce_kernel_f32out(x_ref, w_ref, b_ref, o_ref):
    # f32 output: the output tile (revisited across the last grid axis) is the
    # accumulator — no scratch, no finalize copy.
    r = pl.program_id(2)

    @pl.when(r == 0)
    def _init():
        o_ref[...] = jnp.zeros_like(o_ref)

    o_ref[...] += jnp.dot(x_ref[...], w_ref[...],
                          preferred_element_type=jnp.float32)

    @pl.when(r == pl.num_programs(2) - 1)
    def _finalize():
        o_ref[...] = jnp.tanh(o_ref[...] + b_ref[...].astype(jnp.float32))


def _reduce_kernel_acc(x_ref, w_ref, b_ref, o_ref, acc_ref):
    # Non-f32 output: accumulate in an f32 VMEM scratch, cast once at the end.
    r = pl.program_id(2)

    @pl.when(r == 0)
    def _init():
        acc_ref[...] = jnp.zeros_like(acc_ref)

    acc_ref[...] += jnp.dot(x_ref[...], w_ref[...],
                            preferred_element_type=jnp.float32)

    @pl.when(r == pl.num_programs(2) - 1)
    def _finalize():
        z = acc_ref[...] + b_ref[...].astype(jnp.float32)
        o_ref[...] = jnp.tanh(z).astype(o_ref.dtype)


# --------------------------- wrapper -----------------------------------------


def harmonic_forward(x, w, b=None, *, tile_m=1024, tile_k=1024, tile_n=2048,
                     compute_dtype="auto", allow_fast_path=True):
    """tanh(x @ w + b) via Pallas TPU kernels.

    x: [..., N]   w: [N, K]   b: [K] or None
    compute_dtype: "auto" -> bf16 matmul when x is f32 (f32 accumulate/epilogue);
                   None   -> keep the input dtype for the matmul;
                   or an explicit dtype (e.g. jnp.float8_e4m3fn on v7x).
    """
    orig_dtype = x.dtype
    orig_shape = x.shape
    N = orig_shape[-1]
    x2 = x.reshape(-1, N)
    M = x2.shape[0]
    Nw, K = w.shape
    assert Nw == N, f"in_features mismatch: {Nw} vs {N}"

    if b is None:
        b = jnp.zeros((K,), dtype=jnp.float32)
    b2 = jnp.asarray(b, dtype=jnp.float32).reshape(1, K)

    # bf16 is the default MXU compute dtype when the inputs are f32.
    if isinstance(compute_dtype, str) and compute_dtype == "auto":
        compute_dtype = jnp.bfloat16 if jnp.dtype(orig_dtype) == jnp.dtype(jnp.float32) else None
    if compute_dtype is not None:
        x2 = x2.astype(compute_dtype)
        w = w.astype(compute_dtype)

    in_isz = x2.dtype.itemsize
    out_isz = jnp.dtype(orig_dtype).itemsize
    sub_align = max(8, 32 // in_isz)       # 8 rows f32, 16 bf16, 32 fp8/int8
    budget = _vmem_budget_bytes()

    K_pad = _round_up(K, 128)              # lane-dense output (no vst.msk)
    N_pad = _round_up(N, 128)              # full MXU contraction dim

    # ---------------- fast path: weight fully resident, 1-D grid ------------
    if allow_fast_path:
        tm_f, M_pad_f = _pick_tm(M, tile_m, sub_align)
        w_bytes = N_pad * K_pad * in_isz
        fast_vmem = (w_bytes + K_pad * 4
                     + 2 * (tm_f * N_pad * in_isz + tm_f * K_pad * out_isz))
        if w_bytes <= 8 * 1024 * 1024 and fast_vmem <= budget:
            x_p = x2 if (M_pad_f == M and N_pad == N) else jnp.pad(
                x2, ((0, M_pad_f - M), (0, N_pad - N)))
            w_p = w if (N_pad == N and K_pad == K) else jnp.pad(
                w, ((0, N_pad - N), (0, K_pad - K)))
            b_p = b2 if K_pad == K else jnp.pad(b2, ((0, 0), (0, K_pad - K)))

            cost = pl.CostEstimate(
                flops=2 * M_pad_f * N_pad * K_pad,
                transcendentals=M_pad_f * K_pad,
                bytes_accessed=in_isz * (M_pad_f * N_pad + N_pad * K_pad)
                               + out_isz * M_pad_f * K_pad,
            )
            out = pl.pallas_call(
                _fast_kernel,
                out_shape=jax.ShapeDtypeStruct((M_pad_f, K_pad), orig_dtype),
                grid_spec=pltpu.PrefetchScalarGridSpec(
                    num_scalar_prefetch=0,
                    grid=(M_pad_f // tm_f,),
                    in_specs=[
                        pl.BlockSpec((tm_f, N_pad), lambda i: (i, 0)),    # x tile
                        pl.BlockSpec((N_pad, K_pad), lambda i: (0, 0)),   # full w
                        pl.BlockSpec((1, K_pad), lambda i: (0, 0)),       # bias
                    ],
                    out_specs=pl.BlockSpec((tm_f, K_pad), lambda i: (i, 0)),
                ),
                compiler_params=pltpu.CompilerParams(
                    dimension_semantics=("parallel",),
                    vmem_limit_bytes=budget,
                ),
                cost_estimate=cost,
            )(x_p, w_p, b_p)
            out = out[:M, :K]
            return out.reshape(orig_shape[:-1] + (K,))

    # ---------------- general path: 3-D grid, reduction innermost -----------
    use_acc = jnp.dtype(orig_dtype) != jnp.dtype(jnp.float32)

    def _need(tm_, tk_, tn_):
        return (2 * (tm_ * tn_ * in_isz + tn_ * tk_ * in_isz
                     + tm_ * tk_ * out_isz + tk_ * 4)
                + (tm_ * tk_ * 4 if use_acc else 0))

    tm = tk = tn = None
    M_pad = M
    for shrink in (1, 2, 4, 8, 16):
        tk = _pick_tile(K_pad, max(128, tile_k // shrink))
        tn = _pick_tile(N_pad, max(128, tile_n // shrink))
        tm, M_pad = _pick_tm(M, max(sub_align, tile_m // shrink), sub_align)
        if _need(tm, tk, tn) <= budget:
            break

    x_p = x2 if (M_pad == M and N_pad == N) else jnp.pad(
        x2, ((0, M_pad - M), (0, N_pad - N)))
    w_p = w if (N_pad == N and K_pad == K) else jnp.pad(
        w, ((0, N_pad - N), (0, K_pad - K)))
    b_p = b2 if K_pad == K else jnp.pad(b2, ((0, 0), (0, K_pad - K)))

    grid = (M_pad // tm, K_pad // tk, N_pad // tn)

    cost = pl.CostEstimate(
        flops=2 * M_pad * N_pad * K_pad,
        transcendentals=M_pad * K_pad,
        # truthful HBM traffic: x re-read per K tile, w re-read per M tile
        bytes_accessed=in_isz * (M_pad * N_pad * (K_pad // tk)
                                 + N_pad * K_pad * (M_pad // tm))
                       + out_isz * M_pad * K_pad,
    )

    kernel = _reduce_kernel_acc if use_acc else _reduce_kernel_f32out
    scratch = [pltpu.VMEM((tm, tk), jnp.float32)] if use_acc else []

    out = pl.pallas_call(
        kernel,
        out_shape=jax.ShapeDtypeStruct((M_pad, K_pad), orig_dtype),
        grid_spec=pltpu.PrefetchScalarGridSpec(
            num_scalar_prefetch=0,
            grid=grid,
            in_specs=[
                pl.BlockSpec((tm, tn), lambda i, j, r: (i, r)),   # x tile
                pl.BlockSpec((tn, tk), lambda i, j, r: (r, j)),   # w tile
                pl.BlockSpec((1, tk), lambda i, j, r: (0, j)),    # bias slice
            ],
            out_specs=pl.BlockSpec((tm, tk), lambda i, j, r: (i, j)),
            scratch_shapes=scratch,
        ),
        compiler_params=pltpu.CompilerParams(
            dimension_semantics=("parallel", "parallel", "arbitrary"),
            vmem_limit_bytes=budget,
        ),
        cost_estimate=cost,
    )(x_p, w_p, b_p)

    out = out[:M, :K]
    return out.reshape(orig_shape[:-1] + (K,))


if __name__ == "__main__":
    key = jax.random.PRNGKey(0)
    k_x, k_w, k_b, k_x2, k_w2, k_b2 = jax.random.split(key, 6)

    # --- HarmonicLayer-typical shape: batch=8, in=32, out=32 (fast path) -----
    batch, in_features, out_features = 8, 32, 32
    x = jax.random.normal(k_x, (batch, in_features), dtype=jnp.float32)
    w = jax.random.normal(k_w, (in_features, out_features), dtype=jnp.float32)
    b = jax.random.normal(k_b, (out_features,), dtype=jnp.float32)
    y_ref = jnp.tanh(x @ w + b)

    # Default path: bf16 MXU compute, f32 accumulate/epilogue.
    y = jax.block_until_ready(harmonic_forward(x, w, b))
    assert y.shape == (batch, out_features)
    assert jnp.allclose(y, y_ref, atol=1e-1, rtol=1e-1)

    # Exact f32 compute path.
    y_f32 = jax.block_until_ready(harmonic_forward(x, w, b, compute_dtype=None))
    assert jnp.allclose(y_f32, y_ref, atol=1e-5, rtol=1e-5)

    # --- larger shape forcing the 3-D reduction grid (f32-out in-place acc) --
    b2_, n2_, k2_ = 64, 256, 256
    x2 = jax.random.normal(k_x2, (b2_, n2_), dtype=jnp.float32)
    w2 = jax.random.normal(k_w2, (n2_, k2_), dtype=jnp.float32)
    bb2 = jax.random.normal(k_b2, (k2_,), dtype=jnp.float32)
    y2_ref = jnp.tanh(x2 @ w2 + bb2)
    y2 = jax.block_until_ready(
        harmonic_forward(x2, w2, bb2, tile_n=128, compute_dtype=None,
                         allow_fast_path=False))          # 2 reduction steps
    assert jnp.allclose(y2, y2_ref, atol=1e-4, rtol=1e-4)

    # bf16 in/out exercising the scratch-accumulator reduction kernel.
    y3 = jax.block_until_ready(
        harmonic_forward(x2.astype(jnp.bfloat16), w2.astype(jnp.bfloat16), bb2,
                         tile_n=128, allow_fast_path=False))
    assert y3.dtype == jnp.bfloat16
    assert jnp.allclose(y3.astype(jnp.float32), y2_ref, atol=2e-1, rtol=2e-1)

    # TODO(synk): compute_tuning / _qr_decompose (Hermite-Gauss quadrature
    # tuning analysis) is not part of forward() and is not implemented here.
    print("KERNEL_OK")
</pallas_src>

<mosaic_0001>
module attributes {stable_mosaic.version = 11 : i64} {
  func.func @_fast_kernel(%arg0: i32, %arg1: memref<16x128xbf16, #tpu.memory_space<vmem>>, %arg2: memref<128x128xbf16, #tpu.memory_space<vmem>>, %arg3: memref<1x128xf32, #tpu.memory_space<vmem>>, %arg4: memref<16x128xf32, #tpu.memory_space<vmem>>) attributes {dimension_semantics = [#tpu.dimension_semantics<parallel>], iteration_bounds = array<i64: 1>, scalar_prefetch = 0 : i64, scratch_operands = 0 : i64, tpu.core_type = #tpu.core_type<tc>, window_params = [{transform_indices = @transform_0, window_bounds = array<i64: 16, 128>}, {pipeline_mode = #tpu.pipeline_mode<synchronous>, transform_indices = @transform_1, window_bounds = array<i64: 128, 128>}, {pipeline_mode = #tpu.pipeline_mode<synchronous>, transform_indices = @transform_2, window_bounds = array<i64: 1, 128>}, {transform_indices = @transform_3, window_bounds = array<i64: 16, 128>}]} {
    %c0 = arith.constant 0 : index
    %c0_0 = arith.constant 0 : index
    %0 = vector.load %arg1[%c0, %c0_0] : memref<16x128xbf16, #tpu.memory_space<vmem>>, vector<16x128xbf16>
    %c0_1 = arith.constant 0 : index
    %c0_2 = arith.constant 0 : index
    %1 = vector.load %arg2[%c0_1, %c0_2] : memref<128x128xbf16, #tpu.memory_space<vmem>>, vector<128x128xbf16>
    %cst = arith.constant dense<0.000000e+00> : vector<16x128xf32>
    %2 = tpu.matmul %0, %1, %cst {dimension_numbers = #tpu.dot_dimension_numbers<[1], [0], [0], [1], [0, 0, 1, 1], [], []>} : vector<16x128xbf16>, vector<128x128xbf16>, vector<16x128xf32> -> vector<16x128xf32>
    %c0_3 = arith.constant 0 : index
    %c0_4 = arith.constant 0 : index
    %3 = vector.load %arg3[%c0_3, %c0_4] : memref<1x128xf32, #tpu.memory_space<vmem>>, vector<1x128xf32>
    %4 = vector.broadcast %3 : vector<1x128xf32> to vector<16x128xf32>
    %5 = arith.addf %2, %4 : vector<16x128xf32>
    %6 = math.tanh %5 : vector<16x128xf32>
    %c0_5 = arith.constant 0 : index
    %c0_6 = arith.constant 0 : index
    %7 = vector.load %arg4[%c0_5, %c0_6] : memref<16x128xf32, #tpu.memory_space<vmem>>, vector<16x128xf32>
    tpu.vector_store %arg4[%c0_5, %c0_6], %6 {strides = array<i32>} : memref<16x128xf32, #tpu.memory_space<vmem>>, vector<16x128xf32>,
    return
  }
  func.func @transform_0(%arg0: i32) -> (i32, i32) {
    %c0_i32 = arith.constant 0 : i32
    %c0_i32_0 = arith.constant 0 : i32
    return %arg0, %c0_i32 : i32, i32
  }
  func.func @transform_1(%arg0: i32) -> (i32, i32) {
    %c0_i32 = arith.constant 0 : i32
    %c0_i32_0 = arith.constant 0 : i32
    %c0_i32_1 = arith.constant 0 : i32
    return %c0_i32, %c0_i32_0 : i32, i32
  }
  func.func @transform_2(%arg0: i32) -> (i32, i32) {
    %c0_i32 = arith.constant 0 : i32
    %c0_i32_0 = arith.constant 0 : i32
    %c0_i32_1 = arith.constant 0 : i32
    return %c0_i32, %c0_i32_0 : i32, i32
  }
  func.func @transform_3(%arg0: i32) -> (i32, i32) {
    %c0_i32 = arith.constant 0 : i32
    %c0_i32_0 = arith.constant 0 : i32
    return %arg0, %c0_i32 : i32, i32
  }
}

</mosaic_0001>

<bundles_post_ra>
// kernel: tpu_custom_call.1
= control target key start
LH: loop header
LB: loop body
LE: loop exit
PB: predicated region body
PF: predicated region fallthrough
CT: control target
= control target key end

     0   :  { %8 = vsyncpa [#allocation3], 0  ;;  %s387_s0 = inlined_call_operand.hbm [shape: bf16[16,128], index: 0, kind: input, shape index: {}]   ;;  %s388_s1 = inlined_call_operand.hbm [shape: bf16[128,128], index: 1, kind: input, shape index: {}]   ;;  %s389_s2 = inlined_call_operand.vmem [shape: f32[1,128], index: 2, kind: input, shape index: {}]   ;;  %s390_s3 = inlined_call_operand.hbm [shape: f32[16,128], index: 3, kind: output, shape index: {}]  }
   0x1   :  { %9 = vsyncpa [#allocation6], 0 }
   0x2   :  { %10 = vsyncpa [#allocation4], 0  ;;  %s319_s12 = smov [#allocation2]   ;;  %s247_s16 = scalar_lea.hbm %s387_s0, 128 }
   0x3   :  { %s16_s13 = sshll.u32 %s319_s12, 4  ;;  %p248_p0 = scmp.ne.s32.totalorder %s387_s0, %s247_s16  ;;  %s17_s13 = int_to_ptr.vmem [resolvable:$true] %s16_s13 }
   0x4   :  { %p251_p1 = scmp.lt.u32.totalorder %s247_s16, %s387_s0 }
   0x6   :  { %p253_p2 = pnand %p251_p1, %p248_p0 }
   0x8   :  { %256 = shalt.err (!%p253_p2)
}
   0x9   :  { %s257_s21 = scalar_lea.vmem %s17_s13, 128  ;;  %p262_p4 = scmp.lt.s32.totalorder %s17_s13, %s17_s13 }
   0xa   :  { %p258_p3 = scmp.ne.s32.totalorder %s17_s13, %s257_s21  ;;  %p263_p5 = scmp.lt.s32.totalorder %s257_s21, %s257_s21 }
   0xc   :  { %p264_p6 = por %p263_p5, %p262_p4 }
   0xe   :  { %p265_p7 = pnand %p264_p6, %p258_p3 }
  0x10   :  { %268 = shalt.err (!%p265_p7)
}
  0x11   :  { %s320_s22 = smov 64   ;;  %s321_s23 = smov 4  }
  0x12   :  { %22 = dma.hbm_to_vmem [thread:$0]  %s387_s0, 128, %s17_s13, [#allocation3], %s320_s22, %s320_s22, %s321_s23  }
  0x13   :  { %s322_s26 = smov [#allocation5]   ;;  %s269_s30 = scalar_lea.hbm %s388_s1, 1024 }
  0x14   :  { %s28_s27 = sshll.u32 %s322_s26, 4  ;;  %p270_p8 = scmp.ne.s32.totalorder %s388_s1, %s269_s30  ;;  %s29_s27 = int_to_ptr.vmem [resolvable:$true] %s28_s27 }
  0x15   :  { %p273_p9 = scmp.lt.u32.totalorder %s269_s30, %s388_s1 }
  0x17   :  { %p275_p10 = pnand %p273_p9, %p270_p8 }
  0x19   :  { %278 = shalt.err (!%p275_p10)
}
  0x1a   :  { %s279_s8 = scalar_lea.vmem %s29_s27, 1024  ;;  %p284_p12 = scmp.lt.s32.totalorder %s29_s27, %s29_s27 }
  0x1b   :  { %p280_p11 = scmp.ne.s32.totalorder %s29_s27, %s279_s8  ;;  %p285_p13 = scmp.lt.s32.totalorder %s279_s8, %s279_s8 }
  0x1d   :  { %p286_p0 = por %p285_p13, %p284_p12 }
  0x1f   :  { %p287_p1 = pnand %p286_p0, %p280_p11 }
  0x21   :  { %290 = shalt.err (!%p287_p1)
}
  0x22   :  { %34 = dma.hbm_to_vmem [thread:$0]  %s388_s1, 1024, %s29_s27, [#allocation6], %s320_s22, %s320_s22, %s321_s23  }
  0x23   :  { %313 = dma.done.wait [#allocation3], 128  }
  0x24   :  { %314 = vsyncadd [#allocation3], 4294967168 }
  0x25   :  { %315 = dma.done.wait [#allocation6], 1024  }
  0x26   :  { %316 = vsyncadd [#allocation6], 4294966272  ;;  %v323_v0 = vmov 0.0   ;;  %vm324_vm0 = vmmov 0   ;;  %v234_v1 = vld [vmem:[#allocation5] sm:$0xff]   ;;  %v235_v2 = vld [vmem:[#allocation5 + $0x8] sm:$0xff]  }
  0x27   :  { %205 = vmatprep.subr.bf16.mxu0 %v323_v0  ;;  %221 = vmatprep.mubr.msk.bf16.mxu0 %vm324_vm0, %v323_v0  ;;  %v236_v3 = vld [vmem:[#allocation5 + $0x10] sm:$0xff]   ;;  %v237_v4 = vld [vmem:[#allocation5 + $0x18] sm:$0xff]   ;;  %v238_v5 = vld [vmem:[#allocation5 + $0x20] sm:$0xff]   ;;  %s325_s11 = smov [#allocation7]  }
  0x28   :  { %206 = vmatpush3.bf16.msra.mxu0 %v234_v1  ;;  %v239_v6 = vld [vmem:[#allocation5 + $0x28] sm:$0xff]   ;;  %v240_v7 = vld [vmem:[#allocation5 + $0x30] sm:$0xff]   ;;  %v241_v8 = vld [vmem:[#allocation5 + $0x38] sm:$0xff]   ;;  %s173_s12 = sshll.u32 %s325_s11, 4  ;;  %s174_s12 = int_to_ptr.vmem [resolvable:$true] %s173_s12 }
  0x29   :  { %207 = vmatprep.subr.bf16.mxu0 %v323_v0  ;;  %v242_v9 = vld [vmem:[#allocation2] sm:$0xff]   ;;  %s291_s13 = scalar_lea.vmem %s174_s12, 256  ;;  %p296_p3 = scmp.lt.s32.totalorder %s174_s12, %s174_s12 }
  0x2a   :  { %v186_v10 = vld [vmem:[%s389_s2] ss:$0 sm:$0xff]  ;;  %p292_p2 = scmp.ne.s32.totalorder %s174_s12, %s291_s13  ;;  %p297_p4 = scmp.lt.s32.totalorder %s291_s13, %s291_s13 }
  0x2c   :  { %208 = vmatpush3.bf16.msra.mxu0 %v235_v2  ;;  %p298_p5 = por %p297_p4, %p296_p3 }
  0x2d   :  { %209 = vmatprep.subr.bf16.mxu0 %v323_v0 }
  0x2e   :  { %p299_p6 = pnand %p298_p5, %p292_p2 }
  0x30   :  { %210 = vmatpush3.bf16.msra.mxu0 %v236_v3 }
  0x31   :  { %211 = vmatprep.subr.bf16.mxu0 %v323_v0 }
  0x34   :  { %212 = vmatpush3.bf16.msra.mxu0 %v237_v4 }
  0x35   :  { %213 = vmatprep.subr.bf16.mxu0 %v323_v0 }
  0x38   :  { %214 = vmatpush3.bf16.msra.mxu0 %v238_v5 }
  0x39   :  { %215 = vmatprep.subr.bf16.mxu0 %v323_v0 }
  0x3c   :  { %216 = vmatpush3.bf16.msra.mxu0 %v239_v6 }
  0x3d   :  { %217 = vmatprep.subr.bf16.mxu0 %v323_v0 }
  0x40   :  { %218 = vmatpush3.bf16.msra.mxu0 %v240_v7 }
  0x41   :  { %219 = vmatprep.subr.bf16.mxu0 %v323_v0 }
  0x44   :  { %220 = vmatpush3.bf16.msra.mxu0 %v241_v8 }
  0x47   :  { %222 = vmatmul.mubr.bf16.vlgmr.msra.gmra.mrb[0].mxu0 %v242_v9 }
 0x11a   :  { %v157_v11 = vpop.f32.mrb[0].mxu0 }
 0x11b   :  { %v158_v12 = vadd.f32 %v186_v10, %v157_v11  ;;  %v223_v13 = vpop.f32.mrb[1].mxu0 }
 0x11c   :  { %v160_v14 = vpop.f32.mrb[2].mxu0 }
 0x11d   :  { %243 = vtanh.f32 %v158_v12  ;;  %v161_v15 = vadd.f32 %v186_v10, %v160_v14  ;;  %v224_v16 = vpop.f32.mrb[3].mxu0 }
 0x11f   :  { %245 = vtanh.f32 %v161_v15 }
 0x127   :  { %v244_v17 = vpop.eup %243 }
 0x128   :  { %166 = vst [vmem:[#allocation7] sm:$0xff] %v244_v17 }
 0x129   :  { %v246_v18 = vpop.eup %245 }
 0x12a   :  { %167 = vst [vmem:[#allocation7 + $0x8] sm:$0xff] %v246_v18 }
 0x12b   :  { %302 = shalt.err (!%p299_p6)
}
 0x12c   :  { %s303_s15 = scalar_lea.hbm %s390_s3, 256 }
 0x12d   :  { %p304_p7 = scmp.ne.s32.totalorder %s390_s3, %s303_s15  ;;  %p307_p8 = scmp.lt.u32.totalorder %s303_s15, %s390_s3 }
 0x12f   :  { %p309_p9 = pnand %p307_p8, %p304_p7 }
 0x131   :  { %312 = shalt.err (!%p309_p9)
}
 0x132   :  { %s326_s20 = smov 128   ;;  %s327_s21 = smov 8  }
 0x133   :  { %179 = dma.vmem_to_hbm [thread:$0]  %s174_s12, 256, %s390_s3, [#allocation4], %s326_s20, %s326_s20, %s327_s21  }
 0x134   :  { %317 = dma.done.wait [#allocation4], 256  }
 0x135   :  { %318 = vsyncadd [#allocation4], 4294967040 }
 0x136   :  { %183 = vsyncpa [#allocation3], 1 }
 0x137   :  { %184 = vsyncpa [#allocation6], 1 }
 0x138   :  { %185 = vsyncpa [#allocation4], 1 }

</bundles_post_ra>
